<compile_context>
chip_gen: v5e
topology: v5e:2x2
jax: 0.10.0
libtpu: 0.0.40
codegen_flags: <defaults>
</compile_context>

<pallas_src>
import math
import numpy as np
import jax
import jax.numpy as jnp
from jax import lax
from jax.experimental import pallas as pl
from jax.experimental.pallas import tpu as pltpu


# --------------------------------------------------------------------------- #
# small helpers / one-time capability probes (run eagerly, outside jit)
# --------------------------------------------------------------------------- #

def _tile_padded_bytes(shape, itemsize):
    """Approximate VMEM bytes of `shape` after Mosaic (sublane, lane) padding."""
    s = list(shape)
    if len(s) >= 1:
        s[-1] = -(-s[-1] // 128) * 128
    if len(s) >= 2:
        sub = max(8, 32 // max(1, itemsize))  # 8 for 4B, 16 for 2B, 32 for 1B
        s[-2] = -(-s[-2] // sub) * sub
    return math.prod(s) * itemsize


_BOOL_OUT_SUPPORTED = None


def _bool_output_supported():
    """Probe whether Mosaic supports jnp.bool_ pallas_call outputs."""
    global _BOOL_OUT_SUPPORTED
    if _BOOL_OUT_SUPPORTED is None:
        def _probe(x_ref, o_ref):
            o_ref[...] = x_ref[...] > 0
        try:
            x = jnp.arange(8 * 128, dtype=jnp.int32).reshape(8, 128)
            out = pl.pallas_call(
                _probe, out_shape=jax.ShapeDtypeStruct((8, 128), jnp.bool_))(x)
            out = np.asarray(jax.block_until_ready(out))
            _BOOL_OUT_SUPPORTED = (not bool(out[0, 0])) and bool(out[0, 1])
        except Exception:
            _BOOL_OUT_SUPPORTED = False
    return _BOOL_OUT_SUPPORTED


def _roll_concat(v, s, axis):
    """out[..., n, ...] = v[..., (n + s) % N, ...]  (static s), via slices+concat."""
    n = v.shape[axis]
    s = s % n
    if s == 0:
        return v
    hi = lax.slice_in_dim(v, s, n, axis=axis)
    lo = lax.slice_in_dim(v, 0, s, axis=axis)
    return lax.concatenate([hi, lo], dimension=axis)


_ROLL_IMPL = None


def _get_lane_roll():
    """Pick a lane-roll implementation (pltpu.roll if available; verify its sign)."""
    global _ROLL_IMPL
    if _ROLL_IMPL is not None:
        return _ROLL_IMPL
    xnp = np.broadcast_to(np.arange(128, dtype=np.int32), (8, 128)).copy()
    x = jnp.asarray(xnp)

    def _probe(x_ref, o_ref):
        o_ref[...] = pltpu.roll(x_ref[...], 1, 1)

    try:
        got = np.asarray(jax.block_until_ready(
            pl.pallas_call(_probe,
                           out_shape=jax.ShapeDtypeStruct((8, 128), jnp.int32))(x)))
        if np.array_equal(got, np.roll(xnp, 1, axis=1)):
            # pltpu.roll matches jnp.roll: roll(x, shift)[i] = x[i - shift]
            _ROLL_IMPL = lambda v, s, axis: pltpu.roll(v, (-s) % v.shape[axis], axis)
        elif np.array_equal(got, np.roll(xnp, -1, axis=1)):
            # opposite convention: roll(x, shift)[i] = x[i + shift]
            _ROLL_IMPL = lambda v, s, axis: pltpu.roll(v, s % v.shape[axis], axis)
        else:
            _ROLL_IMPL = _roll_concat
    except Exception:
        _ROLL_IMPL = _roll_concat
    return _ROLL_IMPL


def _shift_axis_zero_fill(v, o, axis):
    """out[..., i, ...] = v[..., i + o, ...] if 0 <= i + o < size else 0 (static o)."""
    size = v.shape[axis]
    if o == 0:
        return v
    if abs(o) >= size:
        return jnp.zeros_like(v)
    zshape = list(v.shape)
    zshape[axis] = abs(o)
    zeros = jnp.zeros(zshape, v.dtype)
    if o > 0:
        core = lax.slice_in_dim(v, o, size, axis=axis)
        return lax.concatenate([core, zeros], dimension=axis)
    core = lax.slice_in_dim(v, 0, size + o, axis=axis)
    return lax.concatenate([zeros, core], dimension=axis)


# --------------------------------------------------------------------------- #
# Affs
# --------------------------------------------------------------------------- #

def make_affs(neighborhood, dist_func="equality", pad=True, concat_dim=0,
              input_dtype=None):
    assert pad, "only pad=True implemented"
    # TODO(synk): pad=False (crop-to-common-min-shape) path not implemented.
    assert concat_dim == 0, "only concat_dim=0 implemented"
    assert dist_func in ("equality", "equality-no-bg"), \
        "only the builtin equality dist funcs are implemented"
    # TODO(synk): arbitrary callable / per-offset ModuleList dist_funcs are not
    # translatable to a static Pallas kernel.

    neighborhood = [tuple(int(v) for v in off) for off in neighborhood]
    ndim = len(neighborhood[0])
    assert all(len(o) == ndim for o in neighborhood)
    K = len(neighborhood)
    no_bg = dist_func == "equality-no-bg"

    out_bool = _bool_output_supported()
    store_dtype = jnp.bool_ if out_bool else jnp.uint8
    lane_roll = _get_lane_roll()

    def affs(x):
        if input_dtype is not None:
            # optional label-dtype narrowing (halves/quarters HBM reads); caller
            # must guarantee the labels fit the narrower dtype.
            x = x.astype(input_dtype)
        squeeze_batch = False
        if x.ndim == ndim:                       # no leading dims: add dummy batch
            x = x[None]
            squeeze_batch = True
        assert x.ndim > ndim
        lead = x.shape[: x.ndim - ndim]
        spatial = x.shape[x.ndim - ndim:]
        B = lead[0]
        rest_lead = tuple(lead[1:])
        after = rest_lead + spatial              # all dims after the batch axis

        # Fold the smallest trailing group of dims whose product is a multiple
        # of 128 into one lane axis (lane-dense loads/stores); free reshape.
        t = 1
        while t < len(after) and math.prod(after[len(after) - t:]) % 128 != 0:
            t += 1
        F = math.prod(after[len(after) - t:])
        outer_dims = after[: len(after) - t]
        n_fold_spatial = min(t, ndim)
        fold_spatial = tuple(range(ndim - n_fold_spatial, ndim))
        unfold_spatial = tuple(range(ndim - n_fold_spatial))
        st = {a: math.prod(spatial[a + 1:]) for a in fold_spatial}

        nd_block = 1 + len(outer_dims) + 1       # batch + outer dims + folded lane
        lane_axis = nd_block - 1
        n_trail = len(outer_dims) + 1

        # static per-offset plan
        plans = []
        mods_needed = set()
        for off in neighborhood:
            outer_shifts = tuple(
                (1 + len(rest_lead) + a, off[a])
                for a in unfold_spatial if off[a] != 0)
            lane_shift = sum(off[a] * st[a] for a in fold_spatial)
            lane_checks = []
            for a in fold_spatial:
                o = off[a]
                if o == 0:
                    continue
                S, sta = spatial[a], st[a]
                M = S * sta
                lo = max(0, -o) * sta            # valid  <=>  lo <= (f % M) < hi
                hi = min(S, S - o) * sta
                lane_checks.append((M, lo, hi))
                mods_needed.add(M)
            plans.append((outer_shifts, lane_shift, tuple(lane_checks)))
        mods_list = tuple(sorted(mods_needed))

        def kernel(x_ref, out_ref):
            lower = x_ref[...]                   # (1, *outer_dims, F)
            lower_fg = (lower > 0) if no_bg else None

            # folded-axis coordinates, hoisted across all K offsets
            iota = lax.broadcasted_iota(
                jnp.int32, (1,) * (nd_block - 1) + (F,), lane_axis)
            rmods = {M: (iota if M == F else iota % M) for M in mods_list}

            for kk, (outer_shifts, lane_shift, lane_checks) in enumerate(plans):
                v = lower
                for axis, o in outer_shifts:     # outer spatial axes: zero-filled shift
                    v = _shift_axis_zero_fill(v, o, axis)
                if lane_shift % F != 0:          # folded axes: lane roll (+ masks below)
                    v = lane_roll(v, lane_shift, lane_axis)
                valid = None
                for M, lo, hi in lane_checks:
                    r = rmods[M]
                    if lo > 0:
                        m = r >= lo
                        valid = m if valid is None else (valid & m)
                    if hi < M:
                        m = r < hi
                        valid = m if valid is None else (valid & m)
                if valid is not None:
                    v = jnp.where(valid, v, jnp.zeros_like(v))
                aff = lower == v
                if no_bg:
                    aff = jnp.logical_and(aff, jnp.logical_and(lower_fg, v > 0))
                out_ref[kk] = aff.astype(store_dtype)

        x_f = x.reshape((B,) + outer_dims + (F,))
        in_block = (1,) + outer_dims + (F,)
        out_block = (K, 1) + outer_dims + (F,)

        itemsize = jnp.dtype(x.dtype).itemsize
        in_bytes = _tile_padded_bytes(in_block, itemsize)
        out_bytes = _tile_padded_bytes(out_block, 1)
        needed = 2 * in_bytes + 2 * out_bytes + (1 << 20)
        try:
            vmem_cap = int(pltpu.get_tpu_info().vmem_capacity_bytes)
        except Exception:
            vmem_cap = 64 * 2 ** 20
        vmem_limit = int(min(int(0.75 * vmem_cap), max(2 * needed, 16 * 2 ** 20)))
        # TODO(synk): spatial tiling (leading-spatial axis + halo) for huge
        # single-batch volumes whose per-element block exceeds ~0.5 * VMEM.

        n_out = K * B * math.prod(after)
        cost = pl.CostEstimate(
            flops=int((3 if no_bg else 1) * n_out),
            transcendentals=0,
            bytes_accessed=int(x.size * itemsize + n_out),
        )

        out = pl.pallas_call(
            kernel,
            out_shape=jax.ShapeDtypeStruct((K, B) + outer_dims + (F,), store_dtype),
            grid=(B,),
            in_specs=[pl.BlockSpec(in_block, lambda b: (b,) + (0,) * n_trail)],
            out_specs=pl.BlockSpec(out_block, lambda b: (0, b) + (0,) * n_trail),
            compiler_params=pltpu.CompilerParams(
                dimension_semantics=("parallel",),
                vmem_limit_bytes=vmem_limit,
            ),
            cost_estimate=cost,
        )(x_f)

        out = out.reshape((K, B) + rest_lead + spatial)
        if squeeze_batch:
            out = out.reshape((K,) + spatial)
        if not out_bool:
            out = out.astype(jnp.bool_)          # fallback only: bool I/O unsupported
        return out

    return affs


# --------------------------------------------------------------------------- #
# reference + test
# --------------------------------------------------------------------------- #

def _ref_affs_numpy(x, neighborhood, dist_func="equality"):
    """NumPy mirror of the torch compute_affs / Affs.forward (pad=True)."""
    x = np.asarray(x)
    outs = []
    for off in neighborhood:
        d = len(off)
        pad_width = [(0, 0)] * (x.ndim - d) + [
            ((-o, 0) if o < 0 else (0, o)) for o in off
        ]
        xp = np.pad(x, pad_width, mode="constant", constant_values=0)
        shape = xp.shape[-d:]
        low = tuple(slice(max(0, -o), min(s, s - o)) for o, s in zip(off, shape))
        up = tuple(slice(max(0, o), min(s, s + o)) for o, s in zip(off, shape))
        a, b = xp[(Ellipsis,) + low], xp[(Ellipsis,) + up]
        aff = a == b
        if dist_func == "equality-no-bg":
            aff = aff & (a > 0) & (b > 0)
        outs.append(aff)
    return np.stack(outs, axis=0)


if __name__ == "__main__":
    k1, k2 = jax.random.split(jax.random.PRNGKey(0))

    # 2-D neighborhood on a (B=2, C=4, H=16, W=16) label volume
    x = jax.random.randint(k1, (2, 4, 16, 16), 0, 5, dtype=jnp.int32)
    neighborhood = [[0, 1], [1, 0], [0, -2], [-2, 0]]

    affs_fn = jax.jit(make_affs(neighborhood, dist_func="equality",
                                pad=True, concat_dim=0))
    out = jax.block_until_ready(affs_fn(x))          # (4, 2, 4, 16, 16) bool
    ref = _ref_affs_numpy(np.asarray(x), neighborhood, "equality")
    assert out.shape == ref.shape, (out.shape, ref.shape)
    assert out.dtype == jnp.bool_
    np.testing.assert_array_equal(np.asarray(out), ref)

    # equality-no-bg distance function
    affs_nb = jax.jit(make_affs(neighborhood, dist_func="equality-no-bg"))
    out_nb = jax.block_until_ready(affs_nb(x))
    ref_nb = _ref_affs_numpy(np.asarray(x), neighborhood, "equality-no-bg")
    np.testing.assert_array_equal(np.asarray(out_nb), ref_nb)

    # 3-D neighborhood on a (B=2, Z=8, Y=16, X=16) volume (exercises the
    # unfolded leading-spatial shift path)
    x3 = jax.random.randint(k2, (2, 8, 16, 16), 0, 4, dtype=jnp.int32)
    nb3 = [[1, 0, 0], [0, 1, 0], [0, 0, 1], [-2, 0, 0]]
    affs3 = jax.jit(make_affs(nb3, dist_func="equality"))
    out3 = jax.block_until_ready(affs3(x3))          # (4, 2, 8, 16, 16) bool
    ref3 = _ref_affs_numpy(np.asarray(x3), nb3, "equality")
    np.testing.assert_array_equal(np.asarray(out3), ref3)

    print("KERNEL_OK")
</pallas_src>

<mosaic_0001>
module attributes {stable_mosaic.version = 11 : i64} {
  func.func @_probe(%arg0: memref<8x128xi32, #tpu.memory_space<vmem>>, %arg1: memref<8x128xi32, #tpu.memory_space<vmem>>) attributes {dimension_semantics = [], scalar_prefetch = 0 : i64, scratch_operands = 0 : i64, tpu.core_type = #tpu.core_type<tc>} {
    %c0 = arith.constant 0 : index
    %c0_0 = arith.constant 0 : index
    %0 = vector.load %arg0[%c0, %c0_0] : memref<8x128xi32, #tpu.memory_space<vmem>>, vector<8x128xi32>
    %c0_i32 = arith.constant 0 : i32
    %1 = vector.broadcast %c0_i32 : i32 to vector<8x128xi32>
    %2 = arith.cmpi sgt, %0, %1 : vector<8x128xi32>
    %c0_1 = arith.constant 0 : index
    %c0_2 = arith.constant 0 : index
    %3 = vector.load %arg1[%c0_1, %c0_2] : memref<8x128xi32, #tpu.memory_space<vmem>>, vector<8x128xi32>
    %4 = arith.extui %2 : vector<8x128xi1> to vector<8x128xi32>
    %cst = arith.constant dense<0> : vector<8x128xi32>
    %5 = arith.cmpi ne, %3, %cst : vector<8x128xi32>
    tpu.vector_store %arg1[%c0_1, %c0_2], %4 {strides = array<i32>} : memref<8x128xi32, #tpu.memory_space<vmem>>, vector<8x128xi32>,
    return
  }
}

module attributes {stable_mosaic.version = 11 : i64} {
  func.func @_probe(%arg0: memref<8x128xi32, #tpu.memory_space<vmem>>, %arg1: memref<8x128xi32, #tpu.memory_space<vmem>>) attributes {dimension_semantics = [], scalar_prefetch = 0 : i64, scratch_operands = 0 : i64, tpu.core_type = #tpu.core_type<tc>} {
    %c0 = arith.constant 0 : index
    %c0_0 = arith.constant 0 : index
    %0 = vector.load %arg0[%c0, %c0_0] : memref<8x128xi32, #tpu.memory_space<vmem>>, vector<8x128xi32>
    %c1_i32 = arith.constant 1 : i32
    %1 = tpu.dynamic_rotate %0 by %c1_i32 dim 1 : vector<8x128xi32>, i32 -> vector<8x128xi32>
    %c0_1 = arith.constant 0 : index
    %c0_2 = arith.constant 0 : index
    %2 = vector.load %arg1[%c0_1, %c0_2] : memref<8x128xi32, #tpu.memory_space<vmem>>, vector<8x128xi32>
    tpu.vector_store %arg1[%c0_1, %c0_2], %1 {strides = array<i32>} : memref<8x128xi32, #tpu.memory_space<vmem>>, vector<8x128xi32>,
    return
  }
}

module attributes {stable_mosaic.version = 11 : i64} {
  func.func @kernel(%arg0: i32, %arg1: memref<1x4x256xi32, #tpu.memory_space<vmem>>, %arg2: memref<4x1x4x256xi8, #tpu.memory_space<vmem>>) attributes {dimension_semantics = [#tpu.dimension_semantics<parallel>], iteration_bounds = array<i64: 2>, scalar_prefetch = 0 : i64, scratch_operands = 0 : i64, tpu.core_type = #tpu.core_type<tc>, window_params = [{transform_indices = @transform_0, window_bounds = array<i64: 1, 4, 256>}, {transform_indices = @transform_1, window_bounds = array<i64: 4, 1, 4, 256>}]} {
    %c0 = arith.constant 0 : index
    %c0_0 = arith.constant 0 : index
    %c0_1 = arith.constant 0 : index
    %0 = vector.load %arg1[%c0, %c0_0, %c0_1] : memref<1x4x256xi32, #tpu.memory_space<vmem>>, vector<1x4x256xi32>
    %1 = tpu.iota {dimensions = array<i32: 2>} : vector<1x1x256xi32>
    %c16_i32 = arith.constant 16 : i32
    %c0_i32 = arith.constant 0 : i32
    %2 = arith.cmpi eq, %c16_i32, %c0_i32 : i32
    %c1_i32 = arith.constant 1 : i32
    %3 = arith.select %2, %c1_i32, %c16_i32 : i32
    %4 = vector.broadcast %3 : i32 to vector<1x1x256xi32>
    %5 = arith.remsi %1, %4 : vector<1x1x256xi32>
    %c0_i32_2 = arith.constant 0 : i32
    %6 = vector.broadcast %c0_i32_2 : i32 to vector<1x1x256xi32>
    %7 = arith.cmpi ne, %5, %6 : vector<1x1x256xi32>
    %c0_i32_3 = arith.constant 0 : i32
    %8 = vector.broadcast %c0_i32_3 : i32 to vector<1x1x256xi32>
    %9 = arith.cmpi slt, %5, %8 : vector<1x1x256xi32>
    %c0_i32_4 = arith.constant 0 : i32
    %10 = arith.cmpi slt, %3, %c0_i32_4 : i32
    %11 = vector.broadcast %10 : i1 to vector<1x1x256xi1>
    %12 = vector.broadcast %11 : vector<1x1x256xi1> to vector<1x1x256xi1>
    %13 = arith.xori %9, %12 : vector<1x1x256xi1>
    %14 = arith.andi %13, %7 : vector<1x1x256xi1>
    %15 = vector.broadcast %3 : i32 to vector<1x1x256xi32>
    %16 = arith.addi %5, %15 : vector<1x1x256xi32>
    %17 = arith.select %14, %16, %5 : vector<1x1x256xi1>, vector<1x1x256xi32>
    %18 = vector.extract_strided_slice %0 {offsets = [0, 0, 1], sizes = [1, 4, 255], strides = [1, 1, 1]} : vector<1x4x256xi32> to vector<1x4x255xi32>
    %19 = vector.extract_strided_slice %0 {offsets = [0, 0, 0], sizes = [1, 4, 1], strides = [1, 1, 1]} : vector<1x4x256xi32> to vector<1x4x1xi32>
    %20 = tpu.concatenate %18, %19 in 2 : vector<1x4x255xi32>, vector<1x4x1xi32> -> vector<1x4x256xi32>
    %c15_i32 = arith.constant 15 : i32
    %21 = vector.broadcast %c15_i32 : i32 to vector<1x1x256xi32>
    %22 = arith.cmpi slt, %17, %21 : vector<1x1x256xi32>
    %c0_i32_5 = arith.constant 0 : i32
    %23 = vector.broadcast %c0_i32_5 : i32 to vector<1x4x256xi32>
    %24 = vector.shape_cast %22 : vector<1x1x256xi1> to vector<1x1x256xi1>
    %25 = vector.broadcast %24 : vector<1x1x256xi1> to vector<1x4x256xi1>
    %26 = arith.select %25, %20, %23 : vector<1x4x256xi1>, vector<1x4x256xi32>
    %27 = arith.cmpi eq, %0, %26 : vector<1x4x256xi32>
    %28 = arith.extui %27 : vector<1x4x256xi1> to vector<1x4x256xi8>
    %c0_6 = arith.constant 0 : index
    %c0_7 = arith.constant 0 : index
    %c0_8 = arith.constant 0 : index
    %c0_9 = arith.constant 0 : index
    %29 = vector.load %arg2[%c0_6, %c0_7, %c0_8, %c0_9] : memref<4x1x4x256xi8, #tpu.memory_space<vmem>>, vector<1x1x4x256xi8>
    %30 = vector.shape_cast %29 : vector<1x1x4x256xi8> to vector<1x4x256xi8>
    %31 = vector.shape_cast %28 : vector<1x4x256xi8> to vector<1x1x4x256xi8>
    tpu.vector_store %arg2[%c0_6, %c0_7, %c0_8, %c0_9], %31 {strides = array<i32>} : memref<4x1x4x256xi8, #tpu.memory_space<vmem>>, vector<1x1x4x256xi8>,
    %32 = vector.extract_strided_slice %0 {offsets = [0, 0, 16], sizes = [1, 4, 240], strides = [1, 1, 1]} : vector<1x4x256xi32> to vector<1x4x240xi32>
    %33 = vector.extract_strided_slice %0 {offsets = [0, 0, 0], sizes = [1, 4, 16], strides = [1, 1, 1]} : vector<1x4x256xi32> to vector<1x4x16xi32>
    %34 = tpu.concatenate %32, %33 in 2 : vector<1x4x240xi32>, vector<1x4x16xi32> -> vector<1x4x256xi32>
    %c240_i32 = arith.constant 240 : i32
    %35 = vector.broadcast %c240_i32 : i32 to vector<1x1x256xi32>
    %36 = arith.cmpi slt, %1, %35 : vector<1x1x256xi32>
    %c0_i32_10 = arith.constant 0 : i32
    %37 = vector.broadcast %c0_i32_10 : i32 to vector<1x4x256xi32>
    %38 = vector.shape_cast %36 : vector<1x1x256xi1> to vector<1x1x256xi1>
    %39 = vector.broadcast %38 : vector<1x1x256xi1> to vector<1x4x256xi1>
    %40 = arith.select %39, %34, %37 : vector<1x4x256xi1>, vector<1x4x256xi32>
    %41 = arith.cmpi eq, %0, %40 : vector<1x4x256xi32>
    %42 = arith.extui %41 : vector<1x4x256xi1> to vector<1x4x256xi8>
    %c1 = arith.constant 1 : index
    %c0_11 = arith.constant 0 : index
    %c0_12 = arith.constant 0 : index
    %c0_13 = arith.constant 0 : index
    %43 = vector.load %arg2[%c1, %c0_11, %c0_12, %c0_13] : memref<4x1x4x256xi8, #tpu.memory_space<vmem>>, vector<1x1x4x256xi8>
    %44 = vector.shape_cast %43 : vector<1x1x4x256xi8> to vector<1x4x256xi8>
    %45 = vector.shape_cast %42 : vector<1x4x256xi8> to vector<1x1x4x256xi8>
    tpu.vector_store %arg2[%c1, %c0_11, %c0_12, %c0_13], %45 {strides = array<i32>} : memref<4x1x4x256xi8, #tpu.memory_space<vmem>>, vector<1x1x4x256xi8>,
    %46 = vector.extract_strided_slice %0 {offsets = [0, 0, 254], sizes = [1, 4, 2], strides = [1, 1, 1]} : vector<1x4x256xi32> to vector<1x4x2xi32>
    %47 = vector.extract_strided_slice %0 {offsets = [0, 0, 0], sizes = [1, 4, 254], strides = [1, 1, 1]} : vector<1x4x256xi32> to vector<1x4x254xi32>
    %48 = tpu.concatenate %46, %47 in 2 : vector<1x4x2xi32>, vector<1x4x254xi32> -> vector<1x4x256xi32>
    %c2_i32 = arith.constant 2 : i32
    %49 = vector.broadcast %c2_i32 : i32 to vector<1x1x256xi32>
    %50 = arith.cmpi sge, %17, %49 : vector<1x1x256xi32>
    %c0_i32_14 = arith.constant 0 : i32
    %51 = vector.broadcast %c0_i32_14 : i32 to vector<1x4x256xi32>
    %52 = vector.shape_cast %50 : vector<1x1x256xi1> to vector<1x1x256xi1>
    %53 = vector.broadcast %52 : vector<1x1x256xi1> to vector<1x4x256xi1>
    %54 = arith.select %53, %48, %51 : vector<1x4x256xi1>, vector<1x4x256xi32>
    %55 = arith.cmpi eq, %0, %54 : vector<1x4x256xi32>
    %56 = arith.extui %55 : vector<1x4x256xi1> to vector<1x4x256xi8>
    %c2 = arith.constant 2 : index
    %c0_15 = arith.constant 0 : index
    %c0_16 = arith.constant 0 : index
    %c0_17 = arith.constant 0 : index
    %57 = vector.load %arg2[%c2, %c0_15, %c0_16, %c0_17] : memref<4x1x4x256xi8, #tpu.memory_space<vmem>>, vector<1x1x4x256xi8>
    %58 = vector.shape_cast %57 : vector<1x1x4x256xi8> to vector<1x4x256xi8>
    %59 = vector.shape_cast %56 : vector<1x4x256xi8> to vector<1x1x4x256xi8>
    tpu.vector_store %arg2[%c2, %c0_15, %c0_16, %c0_17], %59 {strides = array<i32>} : memref<4x1x4x256xi8, #tpu.memory_space<vmem>>, vector<1x1x4x256xi8>,
    %60 = vector.extract_strided_slice %0 {offsets = [0, 0, 224], sizes = [1, 4, 32], strides = [1, 1, 1]} : vector<1x4x256xi32> to vector<1x4x32xi32>
    %61 = vector.extract_strided_slice %0 {offsets = [0, 0, 0], sizes = [1, 4, 224], strides = [1, 1, 1]} : vector<1x4x256xi32> to vector<1x4x224xi32>
    %62 = tpu.concatenate %60, %61 in 2 : vector<1x4x32xi32>, vector<1x4x224xi32> -> vector<1x4x256xi32>
    %c32_i32 = arith.constant 32 : i32
    %63 = vector.broadcast %c32_i32 : i32 to vector<1x1x256xi32>
    %64 = arith.cmpi sge, %1, %63 : vector<1x1x256xi32>
    %c0_i32_18 = arith.constant 0 : i32
    %65 = vector.broadcast %c0_i32_18 : i32 to vector<1x4x256xi32>
    %66 = vector.shape_cast %64 : vector<1x1x256xi1> to vector<1x1x256xi1>
    %67 = vector.broadcast %66 : vector<1x1x256xi1> to vector<1x4x256xi1>
    %68 = arith.select %67, %62, %65 : vector<1x4x256xi1>, vector<1x4x256xi32>
    %69 = arith.cmpi eq, %0, %68 : vector<1x4x256xi32>
    %70 = arith.extui %69 : vector<1x4x256xi1> to vector<1x4x256xi8>
    %c3 = arith.constant 3 : index
    %c0_19 = arith.constant 0 : index
    %c0_20 = arith.constant 0 : index
    %c0_21 = arith.constant 0 : index
    %71 = vector.load %arg2[%c3, %c0_19, %c0_20, %c0_21] : memref<4x1x4x256xi8, #tpu.memory_space<vmem>>, vector<1x1x4x256xi8>
    %72 = vector.shape_cast %71 : vector<1x1x4x256xi8> to vector<1x4x256xi8>
    %73 = vector.shape_cast %70 : vector<1x4x256xi8> to vector<1x1x4x256xi8>
    tpu.vector_store %arg2[%c3, %c0_19, %c0_20, %c0_21], %73 {strides = array<i32>} : memref<4x1x4x256xi8, #tpu.memory_space<vmem>>, vector<1x1x4x256xi8>,
    return
  }
  func.func @transform_0(%arg0: i32) -> (i32, i32, i32) {
    %c0_i32 = arith.constant 0 : i32
    %c0_i32_0 = arith.constant 0 : i32
    %c0_i32_1 = arith.constant 0 : i32
    return %arg0, %c0_i32, %c0_i32_0 : i32, i32, i32
  }
  func.func @transform_1(%arg0: i32) -> (i32, i32, i32, i32) {
    %c0_i32 = arith.constant 0 : i32
    %c0_i32_0 = arith.constant 0 : i32
    %c0_i32_1 = arith.constant 0 : i32
    %c0_i32_2 = arith.constant 0 : i32
    return %c0_i32, %arg0, %c0_i32_0, %c0_i32_1 : i32, i32, i32, i32
  }
}

</mosaic_0001>

<bundles_post_ra>
// kernel: tpu_custom_call.1
= control target key start
LH: loop header
LB: loop body
LE: loop exit
PB: predicated region body
PF: predicated region fallthrough
CT: control target
= control target key end

     0   :  { %6 = vsyncpa [#allocation3], 0  ;;  %s59_s9 = smov [#allocation2]   ;;  %s77_s0 = inlined_call_operand.hbm [shape: s32[8,128], index: 0, kind: input, shape index: {}]   ;;  %s78_s1 = inlined_call_operand.vmem [shape: s32[8,128], index: 1, kind: output, shape index: {}]  }
   0x1   :  { %s12_s8 = sshll.u32 %s77_s0, 4  ;;  %s14_s10 = sshll.u32 %s59_s9, 4  ;;  %s13_s8 = int_to_ptr.hbm [resolvable:$true] %s12_s8  ;;  %s15_s10 = int_to_ptr.vmem [resolvable:$true] %s14_s10 }
   0x2   :  { %17 = dma.hbm_to_vmem [thread:$0]  %s13_s8, 128, %s15_s10, [#allocation3]  }
   0x3   :  { %57 = dma.done.wait [#allocation3], 128  }
   0x4   :  { %58 = vsyncadd [#allocation3], 4294967168  ;;  %v22_v0 = vld [vmem:[#allocation2] sm:$0xff]  ;;  %v60_v1 = vmov 0  }
   0x5   :  { %vm23_vm0 = vcmp.gt.s32.totalorder %v22_v0, 0 }
   0x6   :  { %v24_v2 = vsel %vm23_vm0, 1, %v60_v1 }
   0x7   :  { %25 = vst [vmem:[%s78_s1] sm:$0xff] %v24_v2 }
   0x8   :  { %30 = vsyncpa [#allocation3], 1 }

// kernel: tpu_custom_call.1
= control target key start
LH: loop header
LB: loop body
LE: loop exit
PB: predicated region body
PF: predicated region fallthrough
CT: control target
= control target key end

     0   :  { %6 = vsyncpa [#allocation3], 0  ;;  %s118_s0 = inlined_call_operand.hbm [shape: s32[8,128], index: 0, kind: input, shape index: {}]   ;;  %s119_s1 = inlined_call_operand.hbm [shape: s32[8,128], index: 1, kind: output, shape index: {}]  }
   0x1   :  { %7 = vsyncpa [#allocation4], 0  ;;  %s13_s8 = sshll.u32 %s118_s0, 4  ;;  %s99_s9 = smov [#allocation2]   ;;  %s14_s8 = int_to_ptr.hbm [resolvable:$true] %s13_s8 }
   0x2   :  { %s15_s10 = sshll.u32 %s99_s9, 4  ;;  %s16_s10 = int_to_ptr.vmem [resolvable:$true] %s15_s10 }
   0x3   :  { %18 = dma.hbm_to_vmem [thread:$0]  %s14_s8, 128, %s16_s10, [#allocation3]  }
   0x4   :  { %95 = dma.done.wait [#allocation3], 128  }
   0x5   :  { %96 = vsyncadd [#allocation3], 4294967168  ;;  %v23_v0 = vld [vmem:[#allocation2] sm:$0xff]  ;;  %s100_s11 = smov 1   ;;  %s101_s12 = smov [#allocation5]  }
   0x6   :  { %24 = vrot.lane.b32.xlu0 %v23_v0, %s100_s11  ;;  %s32_s13 = sshll.u32 %s101_s12, 4  ;;  %s34_s16 = sshll.u32 %s119_s1, 4  ;;  %s33_s13 = int_to_ptr.vmem [resolvable:$true] %s32_s13  ;;  %s35_s16 = int_to_ptr.hbm [resolvable:$true] %s34_s16 }
  0x78   :  { %v25_v1 = vpop.permute.xlu0 %24 }
  0x79   :  { %26 = vst [vmem:[#allocation5] sm:$0xff] %v25_v1 }
  0x7a   :  { %37 = dma.vmem_to_hbm [thread:$0]  %s33_s13, 128, %s35_s16, [#allocation4]  }
  0x7b   :  { %97 = dma.done.wait [#allocation4], 128  }
  0x7c   :  { %98 = vsyncadd [#allocation4], 4294967168 }
  0x7d   :  { %42 = vsyncpa [#allocation3], 1 }
  0x7e   :  { %43 = vsyncpa [#allocation4], 1 }

// kernel: affs.1
= control target key start
LH: loop header
LB: loop body
LE: loop exit
PB: predicated region body
PF: predicated region fallthrough
CT: control target
= control target key end

     0   :  { %s526_s6 = smov 0   ;;  %s528_s7 = smov 0   ;;  %s642_s0 = inlined_call_operand.vmem [shape: s32[2,4,256], index: 0, kind: input, shape index: {}]   ;;  %s643_s1 = inlined_call_operand.vmem [shape: u8[4,2,4,256], index: 1, kind: output, shape index: {}]  }
   0x1   :  { %s530_s8 = smov 0  }
   0x2 LB: > { %s539_s9 = sadd.s32 4294967295, %s509_s8   ;;  %s541_s10 = sadd.s32 1, %s509_s8   ;;  %s509_s8 = sphi %s530_s8, %s647_s8   ;;  %s505_s7 = sphi %s528_s7, %s646_s7   ;;  %s501_s6 = sphi %s526_s6, %s645_s6  }
   0x3   : > { %s41_s11 = ssub.s32 %s509_s8, %s541_s10  ;;  %s44_s12 = sadd.s32 1, %s505_s7 }
   0x4   : > { %p42_p0 = scmp.eq.s32.totalorder %s41_s11, 0  ;;  %p54_p1 = scmp.ne.s32.totalorder %s505_s7, %s501_s6 }
   0x5   : > { %p55_p2 = scmp.eq.s32.totalorder %s539_s9, 1  ;;  %p446_p3 = scmp.ge.s32.totalorder %s509_s8, 1 }
   0x6   : > { %s549_s13 = scalar_select %p42_p0, %s505_s7, %s44_s12  }
   0x7   : > { %p551_p4 = por %p55_p2, %p54_p1  ;;  %p87_p5 = scmp.lt.s32.totalorder %s509_s8, 3 }
   0x9   : > { %p88_p6 = pnand %p446_p3, %p87_p5 }
   0xa   : > { %p106_p7 = scmp.lt.s32.totalorder (!%p88_p6), %s539_s9, 1  ;;  %s511_s20 = smov (!%p88_p6), 127  }
   0xb   : > { %91 = sbr.rel (%p88_p6) target bundleno = 634 (0x27a), region = 24  ;;  %s103_s21 = sand.u32 (!%p88_p6), 1, %s501_s6  }
   0xc   : > { %s447_s22 = sshll.u32 (!%p88_p6), %s103_s21, 3  ;;  %s513_s24 = smov (!%p88_p6), 112  }
   0xd   : > { %s584_s23 = scalar_lea.vmem (!%p88_p6), [#allocation2], %s447_s22  ;;  %s514_s25 = smov (!%p88_p6), 2  }
   0xe   : > { %s515_s26 = smov (!%p88_p6), 32  }
  0x10   : > { %s107_s15 = scalar_select %p106_p7, %s539_s9, 1  ;;  %v114_v4 = vlaneseq  ;;  %vm148_vm0 = vcmask 1039360   ;;  %vm164_vm3 = vcmask 1043456   ;;  %v512_v18 = vmov 0  }
  0x11   : > { %vm183_vm8 = vcmask 1040384   ;;  %vm196_vm9 = vcmask 916480   ;;  %vm247_vm15 = vcmask 15360   ;;  %s454_s27 = sshll.u32 (%p551_p4), %s539_s9, 1 }
  0x12   : > { %s457_s16 = sshll.u32 %s107_s15, 3  ;;  %v564_v5 = vand.u32 127, %v114_v4  ;;  %s338_s30 = scalar_lea.vmem (%p551_p4), %s643_s1, %s454_s27 }
  0x13   : > { %s110_s19 = scalar_lea.vmem %s642_s0, %s457_s16 }
  0x14   : > { %v560_v0 = vld [vmem:[%s110_s19] sm:$0xff]  ;;  %v567_v6 = vadd.s32 128, %v564_v5  ;;  %v121_v9 = vand.u32 15, %v564_v5 }
  0x15   : > { %141 = vst [vmem:[#allocation1] ss:$2 sm:$0xff] %v560_v0 }
  0x16   : > { %v128_v8 = vand.u32 15, %v567_v6  ;;  %vm155_vm2 = vcmp.lt.s32.totalorder %v121_v9, 15  ;;  %vm204_vm10 = vcmp.lt.s32.totalorder %v567_v6, 240 }
  0x18   : > { %vm156_vm1 = vcmp.lt.s32.totalorder %v128_v8, 15 }
  0x1c   : > { %v143_v1 = vld.sshfl [vmem:[#allocation1 + $0x8] sm:$0xff pattern:$0x75316420]  ;;  %v142_v2 = vld.sshfl [vmem:[#allocation1] sm:$0xff pattern:$0x75316420] }
  0x1d   : > { %146 = vrot.lane.b32.xlu0 %v143_v1, %s511_s20  ;;  %144 = vrot.lane.b32.xlu1 %v142_v2, %s511_s20  ;;  %150 = vst [vmem:[#allocation1] ss:$2 sm:$0xff] %v560_v0 }
  0x24   : > { %v151_v3 = vld.sshfl [vmem:[#allocation1] sm:$0xff pattern:$0x75316420] }
  0x25   : > { %152 = vrot.lane.b32.xlu0 %v151_v3, %s511_s20 }
  0x8f   : > { %v147_v7 = vpop.permute.xlu0 %146  ;;  %v145_v10 = vpop.permute.xlu1 %144 }
  0x90   : > { %v149_v12 = vsel %vm148_vm0, %v145_v10, %v147_v7 }
  0x91   : > { %v161_v16 = vsel %vm155_vm2, %v149_v12, 0 }
  0x97   : > { %v153_v11 = vpop.permute.xlu0 %152 }
  0x98   : > { %v154_v13 = vsel %vm148_vm0, %v147_v7, %v153_v11  ;;  %vm251_vm0 = vcmp.ge.s32.totalorder %v128_v8, 2 }
  0x99   : > { %v162_v14 = vsel %vm156_vm1, %v154_v13, 0  ;;  %vm250_vm1 = vcmp.ge.s32.totalorder %v121_v9, 2 }
  0x9a   : > { %v163_v15 = vrot.slane %v162_v14, 4 }
  0x9c   : > { %v165_v17 = vsel %vm164_vm3, %v161_v16, %v163_v15 }
  0x9d   : > { %vm166_vm4 = vcmp.eq.s32.totalorder %v560_v0, %v165_v17 }
  0x9e   : > { %v167_v19 = vsel %vm166_vm4, 1, %v512_v18 }
  0x9f   : > { %v168_v20 = vpack.c.b16 %v167_v19, %v167_v19 }
  0xa1   : > { %v169_v21 = vpack.c.b8 %v168_v20, %v168_v20 }
  0xa3   : > { %vm170_vm5 = vnez %v169_v21 }
  0xa4   : > { %v171_v22 = vsel %vm170_vm5, 16843009, %v512_v18 }
  0xa5   : > { %173 = vst [vmem:[#allocation1] ss:$9 sm:$0xff] %v171_v22 }
  0xac   : > { %v174_v23 = vld [vmem:[#allocation1] sm:$0xff]  ;;  %v176_v24 = vld [vmem:[#allocation1 + $0x9] sm:$0xff] }
  0xad   : > { %vm178_vm6 = vnez %v174_v23  ;;  %vm179_vm7 = vnez %v176_v24  ;;  %189 = vst [vmem:[#allocation1] ss:$2 sm:$0xff] %v560_v0 }
  0xae   : > { %v181_v25 = vsel %vm179_vm7, 16843009, %v512_v18  ;;  %v180_v27 = vsel %vm178_vm6, 16843009, %v512_v18  ;;  %vm294_vm7 = vcmask 261120  }
  0xaf   : > { %v182_v26 = vrot.slane %v181_v25, 7 }
  0xb1   : > { %v186_v28 = vsel %vm183_vm8, %v180_v27, %v182_v26 }
  0xb2   : > { %188 = vst [vmem:[%s584_s23] sm:$0x3] %v186_v28 }
  0xb4   : > { %v191_v29 = vld.sshfl [vmem:[#allocation1 + $0x8] sm:$0xff pattern:$0x75316420]  ;;  %v190_v30 = vld.sshfl [vmem:[#allocation1] sm:$0xff pattern:$0x75316420] }
  0xb5   : > { %194 = vrot.lane.b32.xlu1 %v191_v29, %s513_s24  ;;  %198 = vst [vmem:[#allocation1] ss:$2 sm:$0xff] %v560_v0 }
  0xbc   : > { %v199_v31 = vld.sshfl [vmem:[#allocation1] sm:$0xff pattern:$0x75316420] }
  0xbd   : > { %200 = vrot.lane.b32.xlu2 %v199_v31, %s513_s24 }
  0xc5   : > { %192 = vrot.lane.b32.xlu2 %v190_v30, %s513_s24 }
 0x117   : > { %v201_v32 = vpop.permute.xlu2 %200 }
 0x11f   : > { %v193_v35 = vpop.permute.xlu2 %192 }
 0x127   : > { %v195_v33 = vpop.permute.xlu1 %194 }
 0x128   : > { %v202_v34 = vsel %vm196_vm9, %v195_v33, %v201_v32  ;;  %v197_v38 = vsel %vm196_vm9, %v193_v35, %v195_v33  ;;  %vm297_vm9 = vcmp.ge.s32.totalorder %v564_v5, 32 }
 0x129   : > { %v210_v36 = vsel %vm204_vm10, %v202_v34, 0 }
 0x12a   : > { %v211_v37 = vrot.slane %v210_v36, 4 }
 0x12c   : > { %v212_v39 = vsel %vm164_vm3, %v197_v38, %v211_v37 }
 0x12d   : > { %vm213_vm11 = vcmp.eq.s32.totalorder %v560_v0, %v212_v39 }
 0x12e   : > { %v214_v40 = vsel %vm213_vm11, 1, %v512_v18 }
 0x12f   : > { %v215_v41 = vpack.c.b16 %v214_v40, %v214_v40 }
 0x131   : > { %v216_v42 = vpack.c.b8 %v215_v41, %v215_v41 }
 0x133   : > { %vm217_vm12 = vnez %v216_v42 }
 0x134   : > { %v218_v43 = vsel %vm217_vm12, 16843009, %v512_v18 }
 0x135   : > { %220 = vst [vmem:[#allocation1] ss:$9 sm:$0xff] %v218_v43 }
 0x13c   : > { %v221_v44 = vld [vmem:[#allocation1] sm:$0xff]  ;;  %v223_v45 = vld [vmem:[#allocation1 + $0x9] sm:$0xff] }
 0x13d   : > { %vm225_vm13 = vnez %v221_v44  ;;  %vm226_vm14 = vnez %v223_v45  ;;  %236 = vst [vmem:[#allocation1] ss:$2 sm:$0xff] %v560_v0 }
 0x13e   : > { %v228_v46 = vsel %vm226_vm14, 16843009, %v512_v18  ;;  %v227_v48 = vsel %vm225_vm13, 16843009, %v512_v18 }
 0x13f   : > { %v229_v47 = vrot.slane %v228_v46, 7 }
 0x141   : > { %v232_v49 = vsel %vm183_vm8, %v227_v48, %v229_v47 }
 0x142   : > { %450 = vst [vmem:[%s584_s23 + $0x2] sm:$0x3] %v232_v49 }
 0x144   : > { %v237_v50 = vld.sshfl [vmem:[#allocation1 + $0x8] sm:$0xff pattern:$0x75316420] }
 0x145   : > { %238 = vrot.lane.b32.xlu2 %v237_v50, %s514_s25  ;;  %240 = vst [vmem:[#allocation1] ss:$2 sm:$0xff] %v560_v0 }
 0x149   : > { %v357_v31 = vld [vmem:[%s584_s23 + $0x2] sm:$0x3] (%p551_p4) }
 0x14a   : > { %358 = vst [vmem:[%s338_s30 + $0x4] sm:$0x3] (%p551_p4), %v357_v31 }
 0x14c   : > { %v242_v51 = vld.sshfl [vmem:[#allocation1 + $0x8] sm:$0xff pattern:$0x75316420]  ;;  %v241_v52 = vld.sshfl [vmem:[#allocation1] sm:$0xff pattern:$0x75316420] }
 0x14d   : > { %245 = vrot.lane.b32.xlu1 %v242_v51, %s514_s25  ;;  %243 = vrot.lane.b32.xlu0 %v241_v52, %s514_s25 }
 0x19f   : > { %v239_v53 = vpop.permute.xlu2 %238 }
 0x1bf   : > { %v246_v54 = vpop.permute.xlu1 %245  ;;  %v244_v55 = vpop.permute.xlu0 %243 }
 0x1c0   : > { %v248_v56 = vsel %vm247_vm15, %v244_v55, %v246_v54  ;;  %v249_v57 = vsel %vm247_vm15, %v239_v53, %v244_v55 }
 0x1c1   : > { %v257_v58 = vsel %vm251_vm0, %v248_v56, 0  ;;  %v256_v60 = vsel %vm250_vm1, %v249_v57, 0 }
 0x1c2   : > { %v258_v59 = vrot.slane %v257_v58, 4 }
 0x1c4   : > { %v259_v61 = vsel %vm164_vm3, %v256_v60, %v258_v59 }
 0x1c5   : > { %vm260_vm2 = vcmp.eq.s32.totalorder %v560_v0, %v259_v61 }
 0x1c6   : > { %v261_v62 = vsel %vm260_vm2, 1, %v512_v18 }
 0x1c7   : > { %v262_v63 = vpack.c.b16 %v261_v62, %v261_v62 }
 0x1c9   : > { %v263_v1 = vpack.c.b8 %v262_v63, %v262_v63 }
 0x1cb   : > { %vm264_vm4 = vnez %v263_v1 }
 0x1cc   : > { %v265_v2 = vsel %vm264_vm4, 16843009, %v512_v18 }
 0x1cd   : > { %267 = vst [vmem:[#allocation1] ss:$9 sm:$0xff] %v265_v2 }
 0x1d4   : > { %v268_v3 = vld [vmem:[#allocation1] sm:$0xff]  ;;  %v270_v4 = vld [vmem:[#allocation1 + $0x9] sm:$0xff] }
 0x1d5   : > { %vm273_vm5 = vnez %v270_v4  ;;  %283 = vst [vmem:[#allocation1] ss:$2 sm:$0xff] %v560_v0  ;;  %vm272_vm6 = vnez %v268_v3 }
 0x1d6   : > { %v275_v6 = vsel %vm273_vm5, 16843009, %v512_v18  ;;  %v274_v8 = vsel %vm272_vm6, 16843009, %v512_v18 }
 0x1d7   : > { %v276_v7 = vrot.slane %v275_v6, 7 }
 0x1d9   : > { %v279_v9 = vsel %vm183_vm8, %v274_v8, %v276_v7 }
 0x1da   : > { %451 = vst [vmem:[%s584_s23 + $0x4] sm:$0x3] %v279_v9 }
 0x1dc   : > { %v284_v10 = vld.sshfl [vmem:[#allocation1 + $0x8] sm:$0xff pattern:$0x75316420] }
 0x1dd   : > { %285 = vrot.lane.b32.xlu2 %v284_v10, %s515_s26  ;;  %287 = vst [vmem:[#allocation1] ss:$2 sm:$0xff] %v560_v0 }
 0x1e1   : > { %v359_v32 = vld [vmem:[%s584_s23 + $0x4] sm:$0x3] (%p551_p4) }
 0x1e2   : > { %360 = vst [vmem:[%s338_s30 + $0x8] sm:$0x3] (%p551_p4), %v359_v32 }
 0x1e4   : > { %v289_v11 = vld.sshfl [vmem:[#allocation1 + $0x8] sm:$0xff pattern:$0x75316420]  ;;  %v288_v12 = vld.sshfl [vmem:[#allocation1] sm:$0xff pattern:$0x75316420] }
 0x1e5   : > { %292 = vrot.lane.b32.xlu1 %v289_v11, %s515_s26  ;;  %290 = vrot.lane.b32.xlu0 %v288_v12, %s515_s26 }
 0x237   : > { %v286_v13 = vpop.permute.xlu2 %285 }
 0x257   : > { %v293_v14 = vpop.permute.xlu1 %292  ;;  %v291_v15 = vpop.permute.xlu0 %290 }
 0x258   : > { %v295_v16 = vsel %vm294_vm7, %v291_v15, %v293_v14  ;;  %v296_v17 = vsel %vm294_vm7, %v286_v13, %v291_v15 }
 0x259   : > { %v303_v19 = vsel %vm297_vm9, %v296_v17, 0  ;;  %v305_v20 = vrot.slane %v295_v16, 4 }
 0x25b   : > { %v306_v21 = vsel %vm164_vm3, %v303_v19, %v305_v20 }
 0x25c   : > { %vm307_vm10 = vcmp.eq.s32.totalorder %v560_v0, %v306_v21  ;;  %v355_v0 = vld [vmem:[%s584_s23] sm:$0x3] (%p551_p4) }
 0x25d   : > { %v308_v22 = vsel %vm307_vm10, 1, %v512_v18  ;;  %356 = vst [vmem:[%s338_s30] sm:$0x3] (%p551_p4), %v355_v0 }
 0x25e   : > { %v309_v23 = vpack.c.b16 %v308_v22, %v308_v22 }
 0x260   : > { %v310_v24 = vpack.c.b8 %v309_v23, %v309_v23 }
 0x262   : > { %vm311_vm11 = vnez %v310_v24 }
 0x263   : > { %v312_v25 = vsel %vm311_vm11, 16843009, %v512_v18 }
 0x264   : > { %314 = vst [vmem:[#allocation1] ss:$9 sm:$0xff] %v312_v25 }
 0x26b   : > { %v315_v5 = vld [vmem:[#allocation1] sm:$0xff]  ;;  %v317_v26 = vld [vmem:[#allocation1 + $0x9] sm:$0xff] }
 0x26c   : > { %vm319_vm12 = vnez %v315_v5  ;;  %vm320_vm13 = vnez %v317_v26 }
 0x26d   : > { %v322_v27 = vsel %vm320_vm13, 16843009, %v512_v18  ;;  %v321_v29 = vsel %vm319_vm12, 16843009, %v512_v18  ;;  %336 = sbr.rel (!%p551_p4) target bundleno = 634 (0x27a), region = 28 }
 0x26e   : > { %v323_v28 = vrot.slane %v322_v27, 7 }
 0x270   : > { %v326_v30 = vsel %vm183_vm8, %v321_v29, %v323_v28 }
 0x271   : > { %452 = vst [vmem:[%s584_s23 + $0x6] sm:$0x3] %v326_v30 }
 0x278   : > { %v361_v18 = vld [vmem:[%s584_s23 + $0x6] sm:$0x3] }
 0x279   : > { %362 = vst [vmem:[%s338_s30 + $0xc] sm:$0x3] %v361_v18 }
 0x27a PF: > { %p8_p8 = scmp.ge.s32.totalorder %s541_s10, 4   ;;  %s645_s6 = smov %s505_s7 }
 0x27b   : > { %s646_s7 = smov %s549_s13  ;;  %s647_s8 = smov %s541_s10 }
 0x27c   :  { %10 = sbr.rel (!%p8_p8) target bundleno = 2 (0x2), region = 98 }

</bundles_post_ra>
